<compile_context>
chip_gen: v6e
topology: v6e:2x2x1
jax: 0.10.0
libtpu: 0.0.40
codegen_flags: <defaults>
</compile_context>

<pallas_src>
import functools

import jax
import jax.numpy as jnp
from jax import lax
from jax.experimental import pallas as pl
from jax.experimental.pallas import tpu as pltpu


# ----------------------------------------------------------------------------- kernels
def linear_kernel(x_ref, w_ref, *rest, has_bias, fuse_ln, eps):
    """o = x @ w (+ b), optionally followed by LayerNorm over the last dim."""
    o_ref = rest[-1]
    acc = jnp.dot(
        x_ref[...].astype(jnp.bfloat16),      # no-op when x is already bf16
        w_ref[...],                            # weights are pre-cast bf16
        preferred_element_type=jnp.float32,
    )
    idx = 0
    if has_bias:
        acc = acc + rest[idx][...].astype(jnp.float32)
        idx += 1
    if fuse_ln:
        g = rest[idx][...].astype(jnp.float32)
        b = rest[idx + 1][...].astype(jnp.float32)
        mean = jnp.mean(acc, axis=-1, keepdims=True)
        var = jnp.mean((acc - mean) ** 2, axis=-1, keepdims=True)
        acc = (acc - mean) * lax.rsqrt(var + eps) * g + b
    o_ref[...] = acc.astype(o_ref.dtype)


def _mha_context(q, k, v, num_heads):
    """q: (TQ, C) bf16 (softmax scale pre-folded), k/v: (Nk, C) bf16 -> (TQ, C) bf16."""
    TQ, C = q.shape
    d = C // num_heads
    outs = []
    for h in range(num_heads):                         # small nh -> unrolled, LLO-visible
        sl = slice(h * d, (h + 1) * d)
        # contract on the head dim of both operands: no transposed copy of k
        s = lax.dot_general(q[:, sl], k[:, sl], (((1,), (1,)), ((), ())),
                            preferred_element_type=jnp.float32)          # (TQ, Nk)
        s = s - jnp.max(s, axis=-1, keepdims=True)
        p = jnp.exp(s)
        denom = jnp.sum(p, axis=-1, keepdims=True)
        p = (p * pl.reciprocal(denom, approx=True)).astype(jnp.bfloat16)  # EUP recip
        outs.append(jnp.dot(p, v[:, sl], preferred_element_type=jnp.float32))   # (TQ, d)
    # one lane-dense (TQ, C) context tile (single assemble, then one MXU matmul epilogue)
    return jnp.concatenate(outs, axis=-1).astype(jnp.bfloat16)


def attn_kernel(q_ref, kv_ref, wp_ref, bp_ref, o_ref, *, num_heads):
    """q_ref: (TQ, C), kv_ref: (Nk, 2C); output proj fused as an epilogue."""
    C = q_ref.shape[-1]
    kv = kv_ref[...]
    ctx = _mha_context(q_ref[...], kv[:, :C], kv[:, C:], num_heads)
    out = jnp.dot(ctx, wp_ref[...], preferred_element_type=jnp.float32)
    out = out + bp_ref[...].astype(jnp.float32)
    o_ref[...] = out.astype(o_ref.dtype)


def attn_qkv_kernel(qkv_ref, wp_ref, bp_ref, o_ref, *, num_heads):
    """sr_ratio==1 path: single fused qkv block (N, 3C); proj fused as an epilogue."""
    C = qkv_ref.shape[-1] // 3
    qkv = qkv_ref[...]
    ctx = _mha_context(qkv[:, :C], qkv[:, C:2 * C], qkv[:, 2 * C:], num_heads)
    out = jnp.dot(ctx, wp_ref[...], preferred_element_type=jnp.float32)
    out = out + bp_ref[...].astype(jnp.float32)
    o_ref[...] = out.astype(o_ref.dtype)


# ----------------------------------------------------------------------------- wrappers
def _pick_tile_m(M, tile_m):
    """Large row tiles for roofline, but always >=2 tiles (feed both v7x TensorCores)."""
    if M <= 16:
        return M
    if M <= tile_m:
        half = (M + 1) // 2
        return ((half + 7) // 8) * 8
    return max(8, (tile_m // 8) * 8)


def linear_pallas(x, w, bias=None, *, ln_gamma=None, ln_beta=None, eps=1e-5,
                  out_dtype=None, tile_m=512):
    """x: (M, K), w: (K, Nout) -> (M, Nout); optional bias and fused LayerNorm."""
    M, K = x.shape
    Nout = w.shape[1]
    out_dtype = out_dtype if out_dtype is not None else x.dtype

    TM = _pick_tile_m(M, tile_m)
    grid = (pl.cdiv(M, TM),)

    in_specs = [
        pl.BlockSpec((TM, K), lambda i: (i, 0)),        # row-tiled, pipelined
        pl.BlockSpec((K, Nout), lambda i: (0, 0)),      # weight resident (bf16)
    ]
    args = [x, w]
    if bias is not None:
        in_specs.append(pl.BlockSpec((1, Nout), lambda i: (0, 0)))
        args.append(bias.reshape(1, Nout))
    if ln_gamma is not None:
        in_specs += [pl.BlockSpec((1, Nout), lambda i: (0, 0)),
                     pl.BlockSpec((1, Nout), lambda i: (0, 0))]
        args += [ln_gamma.reshape(1, Nout), ln_beta.reshape(1, Nout)]

    return pl.pallas_call(
        functools.partial(linear_kernel, has_bias=bias is not None,
                          fuse_ln=ln_gamma is not None, eps=eps),
        out_shape=jax.ShapeDtypeStruct((M, Nout), out_dtype),
        grid=grid,
        in_specs=in_specs,
        out_specs=pl.BlockSpec((TM, Nout), lambda i: (i, 0)),
        compiler_params=pltpu.CompilerParams(dimension_semantics=("parallel",)),
    )(*args)


def attention_core_pallas(q, kv, w_proj, b_proj, num_heads, *, out_dtype, tile_q=256):
    """q: (B, N, C), kv: (B, Nk, 2C) -> (B, N, C); output projection fused."""
    B, N, C = q.shape
    Nk = kv.shape[1]
    TQ = N if N <= tile_q else max(8, (tile_q // 8) * 8)
    grid = (B, pl.cdiv(N, TQ))
    return pl.pallas_call(
        functools.partial(attn_kernel, num_heads=num_heads),
        out_shape=jax.ShapeDtypeStruct((B, N, C), out_dtype),
        grid=grid,
        in_specs=[
            pl.BlockSpec((None, TQ, C), lambda b, i: (b, i, 0)),        # q tile
            pl.BlockSpec((None, Nk, 2 * C), lambda b, i: (b, 0, 0)),    # kv resident per b
            pl.BlockSpec((C, C), lambda b, i: (0, 0)),                  # w_proj resident
            pl.BlockSpec((1, C), lambda b, i: (0, 0)),                  # b_proj resident
        ],
        out_specs=pl.BlockSpec((None, TQ, C), lambda b, i: (b, i, 0)),  # lane-dense store
        compiler_params=pltpu.CompilerParams(
            dimension_semantics=("parallel", "parallel")),
    )(q, kv, w_proj, b_proj.reshape(1, C))


def attention_fused_qkv_pallas(qkv, w_proj, b_proj, num_heads, *, out_dtype):
    """sr_ratio==1: qkv (B, N, 3C) read once per batch element -> (B, N, C)."""
    B, N, C3 = qkv.shape
    C = C3 // 3
    return pl.pallas_call(
        functools.partial(attn_qkv_kernel, num_heads=num_heads),
        out_shape=jax.ShapeDtypeStruct((B, N, C), out_dtype),
        grid=(B,),
        in_specs=[
            pl.BlockSpec((None, N, C3), lambda b: (b, 0, 0)),
            pl.BlockSpec((C, C), lambda b: (0, 0)),
            pl.BlockSpec((1, C), lambda b: (0, 0)),
        ],
        out_specs=pl.BlockSpec((None, N, C), lambda b: (b, 0, 0)),
        compiler_params=pltpu.CompilerParams(dimension_semantics=("parallel",)),
    )(qkv, w_proj, b_proj.reshape(1, C))


# ----------------------------------------------------------------------------- module
def init_attention_params(key, dim, num_heads, sr_ratio):
    """f32 'torch-equivalent' parameters (used by the reference)."""
    ks = jax.random.split(key, 6)
    s = 0.02
    params = dict(
        w_q=jax.random.normal(ks[0], (dim, dim), jnp.float32) * s,        # qkv_bias=False
        w_kv=jax.random.normal(ks[1], (dim, 2 * dim), jnp.float32) * s,   # qkv_bias=False
        w_proj=jax.random.normal(ks[2], (dim, dim), jnp.float32) * s,
        b_proj=jax.random.normal(ks[3], (dim,), jnp.float32) * s,
    )
    if sr_ratio > 1:
        params.update(
            w_sr=jax.random.normal(ks[4], (dim, dim, sr_ratio, sr_ratio), jnp.float32) * s,  # OIHW
            b_sr=jax.random.normal(ks[5], (dim,), jnp.float32) * s,
            g_ln=jnp.ones((dim,), jnp.float32),
            b_ln=jnp.zeros((dim,), jnp.float32),
        )
    return params


def prepare_kernel_params(params, dim, num_heads, sr_ratio):
    """One-time transform: bf16 weights, softmax scale folded into w_q, sr conv flattened."""
    scale = (dim // num_heads) ** (-0.5)
    w_q_s = params["w_q"] * scale
    kp = dict(
        w_q=w_q_s.astype(jnp.bfloat16),
        w_kv=params["w_kv"].astype(jnp.bfloat16),
        w_qkv=jnp.concatenate([w_q_s, params["w_kv"]], axis=1).astype(jnp.bfloat16),
        w_proj=params["w_proj"].astype(jnp.bfloat16),
        b_proj=params["b_proj"].astype(jnp.bfloat16),
    )
    if sr_ratio > 1:
        kp.update(
            # (C*sr*sr, C): rows ordered (i, dy, dx) to match the patch column order
            w_sr_flat=params["w_sr"].reshape(dim, -1).T.astype(jnp.bfloat16),
            b_sr=params["b_sr"].astype(jnp.bfloat16),
            g_ln=params["g_ln"].astype(jnp.bfloat16),
            b_ln=params["b_ln"].astype(jnp.bfloat16),
        )
    return kp


def pvt_attention_forward(x, kparams, H, W, num_heads, sr_ratio):
    """x: (B, N, C) with N == H*W."""
    B, N, C = x.shape
    x_bf = x.astype(jnp.bfloat16)           # single cast; all activation traffic is bf16
    x2 = x_bf.reshape(B * N, C)

    if sr_ratio > 1:
        # ---- q projection (no bias, scale folded into the weight)
        q = linear_pallas(x2, kparams["w_q"], out_dtype=jnp.bfloat16).reshape(B, N, C)

        # ---- spatial-reduction path: conv(kernel=stride=sr) == patch extraction + matmul
        Ho, Wo = H // sr_ratio, W // sr_ratio
        patches = x_bf.reshape(B, Ho, sr_ratio, Wo, sr_ratio, C)
        patches = patches.transpose(0, 1, 3, 5, 2, 4)                    # (B, Ho, Wo, C, sr, sr)
        patches = patches.reshape(B * Ho * Wo, C * sr_ratio * sr_ratio)
        # sr conv + bias + LayerNorm fused into one pallas_call
        kv_in = linear_pallas(
            patches, kparams["w_sr_flat"], kparams["b_sr"],
            ln_gamma=kparams["g_ln"], ln_beta=kparams["b_ln"], eps=1e-5,
            out_dtype=jnp.bfloat16)
        Nk = Ho * Wo

        # ---- kv projection (no bias)
        kv = linear_pallas(kv_in, kparams["w_kv"], out_dtype=jnp.bfloat16).reshape(B, Nk, 2 * C)

        # ---- attention + fused output projection
        out = attention_core_pallas(q, kv, kparams["w_proj"], kparams["b_proj"],
                                    num_heads, out_dtype=x.dtype)
    else:
        if N <= 512:
            # ---- fused q+kv projection: x streamed from HBM once
            qkv = linear_pallas(x2, kparams["w_qkv"],
                                out_dtype=jnp.bfloat16).reshape(B, N, 3 * C)
            out = attention_fused_qkv_pallas(qkv, kparams["w_proj"], kparams["b_proj"],
                                             num_heads, out_dtype=x.dtype)
        else:
            q = linear_pallas(x2, kparams["w_q"], out_dtype=jnp.bfloat16).reshape(B, N, C)
            kv = linear_pallas(x2, kparams["w_kv"], out_dtype=jnp.bfloat16).reshape(B, N, 2 * C)
            out = attention_core_pallas(q, kv, kparams["w_proj"], kparams["b_proj"],
                                        num_heads, out_dtype=x.dtype)
    return out


# ----------------------------------------------------------------------------- reference
def pvt_attention_ref(x, params, H, W, num_heads, sr_ratio):
    B, N, C = x.shape
    d = C // num_heads
    scale = d ** (-0.5)
    q = (x @ params["w_q"]).reshape(B, N, num_heads, d).transpose(0, 2, 1, 3)
    if sr_ratio > 1:
        x_ = x.transpose(0, 2, 1).reshape(B, C, H, W)
        x_ = jax.lax.conv_general_dilated(
            x_, params["w_sr"], (sr_ratio, sr_ratio), "VALID",
            dimension_numbers=("NCHW", "OIHW", "NCHW"),
        ) + params["b_sr"][None, :, None, None]
        x_ = x_.reshape(B, C, -1).transpose(0, 2, 1)
        mean = x_.mean(-1, keepdims=True)
        var = ((x_ - mean) ** 2).mean(-1, keepdims=True)
        x_ = (x_ - mean) / jnp.sqrt(var + 1e-5) * params["g_ln"] + params["b_ln"]
        kv_in = x_
    else:
        kv_in = x
    kv = (kv_in @ params["w_kv"]).reshape(B, -1, 2, num_heads, d).transpose(2, 0, 3, 1, 4)
    k, v = kv[0], kv[1]
    attn = (q @ k.transpose(0, 1, 3, 2)) * scale
    attn = jax.nn.softmax(attn, axis=-1)
    out = (attn @ v).transpose(0, 2, 1, 3).reshape(B, N, C)
    return out @ params["w_proj"] + params["b_proj"]


# ----------------------------------------------------------------------------- main
if __name__ == "__main__":
    key = jax.random.PRNGKey(0)
    B, H, W, C = 2, 8, 8, 32
    num_heads = 4
    N = H * W

    k_x, k_p1, k_p2 = jax.random.split(key, 3)
    x = jax.random.normal(k_x, (B, N, C), jnp.float32)

    # Exercise both the spatial-reduction (sr_ratio=2) and fused-qkv (sr_ratio=1) paths.
    for sr_ratio, k_p in ((2, k_p1), (1, k_p2)):
        params = init_attention_params(k_p, C, num_heads, sr_ratio)
        kparams = prepare_kernel_params(params, C, num_heads, sr_ratio)

        out = pvt_attention_forward(x, kparams, H, W, num_heads, sr_ratio)
        out = jax.block_until_ready(out)

        ref = pvt_attention_ref(x, params, H, W, num_heads, sr_ratio)
        assert out.shape == (B, N, C)
        # bf16 MXU operands (f32 accumulation) -> loosened tolerance vs the f32 reference
        err = float(jnp.max(jnp.abs(out - ref)))
        assert jnp.allclose(out, ref, rtol=2e-2, atol=2e-2), (sr_ratio, err)

    print("KERNEL_OK")
</pallas_src>

<mosaic_0001>
module attributes {stable_mosaic.version = 11 : i64} {
  func.func @linear_kernel(%arg0: i32, %arg1: memref<64x32xbf16, #tpu.memory_space<vmem>>, %arg2: memref<32x32xbf16, #tpu.memory_space<vmem>>, %arg3: memref<64x32xbf16, #tpu.memory_space<vmem>>) attributes {dimension_semantics = [#tpu.dimension_semantics<parallel>], iteration_bounds = array<i64: 2>, scalar_prefetch = 0 : i64, scratch_operands = 0 : i64, tpu.core_type = #tpu.core_type<tc>, window_params = [{transform_indices = @transform_0, window_bounds = array<i64: 64, 32>}, {pipeline_mode = #tpu.pipeline_mode<synchronous>, transform_indices = @transform_1, window_bounds = array<i64: 32, 32>}, {transform_indices = @transform_2, window_bounds = array<i64: 64, 32>}]} {
    %c0 = arith.constant 0 : index
    %c0_0 = arith.constant 0 : index
    %0 = vector.load %arg1[%c0, %c0_0] : memref<64x32xbf16, #tpu.memory_space<vmem>>, vector<64x32xbf16>
    %c0_1 = arith.constant 0 : index
    %c0_2 = arith.constant 0 : index
    %1 = vector.load %arg2[%c0_1, %c0_2] : memref<32x32xbf16, #tpu.memory_space<vmem>>, vector<32x32xbf16>
    %cst = arith.constant dense<0.000000e+00> : vector<64x32xf32>
    %2 = tpu.matmul %0, %1, %cst {dimension_numbers = #tpu.dot_dimension_numbers<[1], [0], [0], [1], [0, 0, 1, 1], [], []>} : vector<64x32xbf16>, vector<32x32xbf16>, vector<64x32xf32> -> vector<64x32xf32>
    %3 = arith.truncf %2 : vector<64x32xf32> to vector<64x32xbf16>
    %c0_3 = arith.constant 0 : index
    %c0_4 = arith.constant 0 : index
    %4 = vector.load %arg3[%c0_3, %c0_4] : memref<64x32xbf16, #tpu.memory_space<vmem>>, vector<64x32xbf16>
    tpu.vector_store %arg3[%c0_3, %c0_4], %3 {strides = array<i32>} : memref<64x32xbf16, #tpu.memory_space<vmem>>, vector<64x32xbf16>,
    return
  }
  func.func @transform_0(%arg0: i32) -> (i32, i32) {
    %c0_i32 = arith.constant 0 : i32
    %c0_i32_0 = arith.constant 0 : i32
    return %arg0, %c0_i32 : i32, i32
  }
  func.func @transform_1(%arg0: i32) -> (i32, i32) {
    %c0_i32 = arith.constant 0 : i32
    %c0_i32_0 = arith.constant 0 : i32
    %c0_i32_1 = arith.constant 0 : i32
    return %c0_i32, %c0_i32_0 : i32, i32
  }
  func.func @transform_2(%arg0: i32) -> (i32, i32) {
    %c0_i32 = arith.constant 0 : i32
    %c0_i32_0 = arith.constant 0 : i32
    return %arg0, %c0_i32 : i32, i32
  }
}

</mosaic_0001>

<bundles_post_ra>
// kernel: tpu_custom_call.1
= control target key start
LH: loop header
LB: loop body
LE: loop exit
PB: predicated region body
PF: predicated region fallthrough
CT: control target
= control target key end

     0   :  { %s463_s9 = smov 0   ;;  %s494_s0 = inlined_call_operand.vmem [shape: bf16[128,32], index: 0, kind: input, shape index: {}]   ;;  %s495_s1 = inlined_call_operand.vmem [shape: bf16[32,32], index: 1, kind: input, shape index: {}]   ;;  %s496_s2 = inlined_call_operand.vmem [shape: bf16[128,32], index: 2, kind: output, shape index: {}]  }
   0x1 LB: > { %s367_s10 = sadd.s32 4294967295, %s446_s9   ;;  %p371_p0 = scmp.ge.s32.totalorder %s446_s9, 1  ;;  %s446_s9 = sphi %s463_s9, %s12_s9  }
   0x2   : > { %p113_p1 = scmp.lt.s32.totalorder %s446_s9, 3 }
   0x4   : > { %p114_p2 = pnand %p371_p0, %p113_p1 }
   0x5   : > { %s372_s13 = sshll.u32 (!%p114_p2), %s367_s10, 3 }
   0x6   : > { %117 = sbr.rel (%p114_p2) target bundleno = 222 (0xde), region = 28  ;;  %p136_p3 = scmp.lt.s32.totalorder (!%p114_p2), %s372_s13, 15 }
   0xb   : > { %v434_v0 = vld [vmem:[%s495_s1 + $0x8] sm:$0xff]   ;;  %v435_v1 = vld [vmem:[%s495_s1] sm:$0xff]   ;;  %s498_s13 = smov (!%p136_p3, %s372_s13), 15  ;;  %vm192_vm0 = vcmask 261120   ;;  %vm302_vm1 = vcmask 257024  }
   0xc   : > { %410 = vmatprep.subr.bf16.mxu0 %v434_v0  ;;  %422 = vmatprep.subr.bf16.mxu1 %v434_v0  ;;  %s373_s16 = sshll.u32 %s498_s13, 2 }
   0xd   : > { %411 = vmatpush3.bf16.msra.mxu0 %v434_v0  ;;  %424 = vmatpush3.bf16.msra.mxu1 %v434_v0  ;;  %s139_s19 = scalar_lea.vmem %s494_s0, %s373_s16  ;;  %s145_s22 = scalar_lea.vmem %s496_s2, %s373_s16 }
   0xe   : > { %412 = vmatprep.subr.bf16.mxu0 %v435_v1  ;;  %423 = vmatprep.subr.bf16.mxu1 %v435_v1  ;;  %v436_v2 = vld [vmem:[%s139_s19] sm:$0xff]   ;;  %v437_v3 = vld [vmem:[%s139_s19 + $0x10] sm:$0xff]   ;;  %v438_v4 = vld [vmem:[%s139_s19 + $0x8] sm:$0xff]  }
   0xf   : > { %414 = vmatprep.mubr.msk.bf16.mxu0 %vm192_vm0, %v436_v2  ;;  %418 = vmatprep.mubr.msk.bf16.mxu1 %vm192_vm0, %v437_v3  ;;  %v439_v5 = vld [vmem:[%s139_s19 + $0x18] sm:$0xff]  }
  0x11   : > { %413 = vmatpush3.bf16.msra.mxu0 %v435_v1  ;;  %425 = vmatpush3.bf16.msra.mxu1 %v435_v1 }
  0x14   : > { %415 = vmatmul.mubr.msk.bf16.vlgmr.msra.gmra.mxu0 %vm192_vm0, %v438_v4  ;;  %419 = vmatmul.mubr.msk.bf16.vlgmr.msra.gmra.mxu1 %vm192_vm0, %v439_v5 }
  0xd4   : > { %v416_v6 = vpop.f32.mrf.mxu0  ;;  %v420_v8 = vpop.f32.mrf.mxu1 }
  0xd5   : > { %v398_v7 = vpack.c.bf16 %v416_v6, %v416_v6  ;;  %v402_v9 = vpack.c.bf16 %v420_v8, %v420_v8 }
  0xd6   : > { %v239_v10 = vpop.f32.mrf.mxu0  ;;  %v255_v12 = vpop.f32.mrf.mxu1 }
  0xd7   : > { %305 = vst.msk [vmem:[%s145_s22 + $0x8] sm:$0xf] %vm302_vm1, %v398_v7  ;;  %v396_v11 = vpack.c.bf16 %v239_v10, %v239_v10  ;;  %309 = vst.msk [vmem:[%s145_s22 + $0x18] sm:$0xf] %vm302_vm1, %v402_v9  ;;  %v400_v13 = vpack.c.bf16 %v255_v12, %v255_v12 }
  0xd8   : > { %v417_v14 = vpop.f32.mrf.mxu0  ;;  %v421_v16 = vpop.f32.mrf.mxu1 }
  0xd9   : > { %303 = vst.msk [vmem:[%s145_s22] sm:$0xf] %vm302_vm1, %v396_v11  ;;  %v399_v15 = vpack.c.bf16 %v417_v14, %v417_v14  ;;  %307 = vst.msk [vmem:[%s145_s22 + $0x10] sm:$0xf] %vm302_vm1, %v400_v13  ;;  %v403_v17 = vpack.c.bf16 %v421_v16, %v421_v16 }
  0xda   : > { %v242_v18 = vpop.f32.mrf.mxu0  ;;  %v258_v20 = vpop.f32.mrf.mxu1 }
  0xdb   : > { %306 = vst.msk [vmem:[%s145_s22 + $0xc] sm:$0xf] %vm302_vm1, %v399_v15  ;;  %v397_v19 = vpack.c.bf16 %v242_v18, %v242_v18  ;;  %310 = vst.msk [vmem:[%s145_s22 + $0x1c] sm:$0xf] %vm302_vm1, %v403_v17  ;;  %v401_v21 = vpack.c.bf16 %v258_v20, %v258_v20 }
  0xdd   : > { %304 = vst.msk [vmem:[%s145_s22 + $0x4] sm:$0xf] %vm302_vm1, %v397_v19  ;;  %308 = vst.msk [vmem:[%s145_s22 + $0x14] sm:$0xf] %vm302_vm1, %v401_v21 }
  0xde PF: > { %s12_s9 = sadd.s32 1, %s446_s9  }
  0xdf   : > { %p9_p4 = scmp.ge.s32.totalorder %s12_s9, 4  }
  0xe1   :  { %11 = sbr.rel (!%p9_p4) target bundleno = 1 (0x1), region = 58 }

</bundles_post_ra>
